<compile_context>
chip_gen: v5e
topology: v5e:2x2
jax: 0.10.0
libtpu: 0.0.40
codegen_flags: <defaults>
</compile_context>

<pallas_src>
import jax
import jax.numpy as jnp
from jax.experimental import pallas as pl
from jax.experimental.pallas import tpu as pltpu


def _multi_output_kernel(x_ref, w1_ref, b1_ref, w2_ref, b2_ref, w3_ref, b3_ref,
                         h_ref, y_ref):
    """One batch tile: 3 matmuls + biases + ReLUs; h and y stored separately."""
    # Cast the streamed input to the (possibly bf16) weight dtype in-kernel.
    x = x_ref[...].astype(w1_ref.dtype)

    # ---- bottom model: Linear(32->64) + ReLU ----
    h = jnp.dot(x, w1_ref[...], preferred_element_type=jnp.float32) + b1_ref[...]
    h = jnp.maximum(h, 0.0)
    h_ref[...] = h.astype(h_ref.dtype)

    # ---- top model: Linear(64->64) + ReLU + Linear(64->16) ----
    t = jnp.dot(h.astype(w2_ref.dtype), w2_ref[...],
                preferred_element_type=jnp.float32) + b2_ref[...]
    t = jnp.maximum(t, 0.0)
    y = jnp.dot(t.astype(w3_ref.dtype), w3_ref[...],
                preferred_element_type=jnp.float32) + b3_ref[...]
    y_ref[...] = y.astype(y_ref.dtype)


def multi_output_forward(x, params, *, tb_max=4096, compute_dtype=None):
    """Returns (y, h) exactly like MultiOutputModel.forward.

    compute_dtype=jnp.bfloat16: weights are pre-cast (tiny, VMEM-resident),
    x is cast inside the kernel (no extra HBM pass), and outputs are written
    in bf16 (halves the dominant output traffic). Accumulation stays f32.
    """
    w1, b1, w2, b2, w3, b3 = params
    out_dtype = x.dtype
    if compute_dtype is not None:
        cast = lambda a: a.astype(compute_dtype)
        w1, b1, w2, b2, w3, b3 = map(cast, (w1, b1, w2, b2, w3, b3))
        out_dtype = compute_dtype

    B, D_in = x.shape
    H = w1.shape[1]
    D_out = w3.shape[1]
    assert tb_max % 8 == 0, "row tile cap must be a multiple of 8"

    # Row tile: multiple of 8 (f32 sublanes). Aim for >=2 grid steps so v7x's
    # two TensorCores both participate; cap at tb_max. No wrapper-side padding:
    # Pallas masks the ragged last block.
    MIN_GRID = 2
    target = -(-B // MIN_GRID)              # ceil(B / MIN_GRID)
    target = ((target + 7) // 8) * 8        # round up to multiple of 8
    TB = max(8, min(tb_max, target))
    grid = (pl.cdiv(B, TB),)

    # Weights/biases: full-array blocks with a constant index_map -> DMA'd once,
    # VMEM-resident across all grid steps.
    resident = lambda a: pl.BlockSpec(a.shape, lambda i: (0,) * a.ndim)

    in_itemsize = jnp.dtype(x.dtype).itemsize
    w_itemsize = jnp.dtype(w1.dtype).itemsize
    out_itemsize = jnp.dtype(out_dtype).itemsize
    flops = 2 * B * (D_in * H + H * H + H * D_out)
    bytes_accessed = (
        in_itemsize * B * D_in                                   # x (streamed)
        + w_itemsize * (D_in * H + H + H * H + H + H * D_out + D_out)
        + out_itemsize * B * (H + D_out))                        # h, y outputs
    cost = pl.CostEstimate(flops=flops, transcendentals=0,
                           bytes_accessed=bytes_accessed)

    h_out, y_out = pl.pallas_call(
        _multi_output_kernel,
        out_shape=(jax.ShapeDtypeStruct((B, H), out_dtype),
                   jax.ShapeDtypeStruct((B, D_out), out_dtype)),
        grid=grid,
        in_specs=[
            pl.BlockSpec((TB, D_in), lambda i: (i, 0)),   # streamed batch tiles
            resident(w1), resident(b1),
            resident(w2), resident(b2),
            resident(w3), resident(b3),
        ],
        out_specs=(pl.BlockSpec((TB, H), lambda i: (i, 0)),
                   pl.BlockSpec((TB, D_out), lambda i: (i, 0))),
        compiler_params=pltpu.CompilerParams(
            dimension_semantics=("parallel",),
            vmem_limit_bytes=32 * 1024 * 1024,
        ),
        cost_estimate=cost,
    )(x, w1, b1, w2, b2, w3, b3)

    return y_out, h_out


def init_params(key, d_in=32, hidden=64, d_out=16):
    """Deterministic init mimicking nn.Linear default (uniform +/- 1/sqrt(fan_in))."""
    ks = jax.random.split(key, 6)

    def lin(kw, kb, fi, fo):
        bound = 1.0 / jnp.sqrt(fi)
        w = jax.random.uniform(kw, (fi, fo), jnp.float32, -bound, bound)
        b = jax.random.uniform(kb, (1, fo), jnp.float32, -bound, bound)
        return w, b

    w1, b1 = lin(ks[0], ks[1], d_in, hidden)
    w2, b2 = lin(ks[2], ks[3], hidden, hidden)
    w3, b3 = lin(ks[4], ks[5], hidden, d_out)
    return (w1, b1, w2, b2, w3, b3)


def reference_forward(x, params):
    w1, b1, w2, b2, w3, b3 = params
    h = jnp.maximum(x @ w1 + b1, 0.0)
    t = jnp.maximum(h @ w2 + b2, 0.0)
    y = t @ w3 + b3
    return y, h


if __name__ == "__main__":
    key = jax.random.PRNGKey(0)
    k_x, k_p, k_x2, k_x3 = jax.random.split(key, 4)

    B, D_IN, HID, D_OUT = 8, 32, 64, 16
    params = init_params(k_p, D_IN, HID, D_OUT)

    # --- small batch: single 8-row tile, grid=(1,) ---
    x = jax.random.normal(k_x, (B, D_IN), dtype=jnp.float32)
    y, h = multi_output_forward(x, params)
    jax.block_until_ready((y, h))
    y_ref, h_ref = reference_forward(x, params)
    assert y.shape == (B, D_OUT) and h.shape == (B, HID)
    assert jnp.allclose(y, y_ref, atol=1e-5, rtol=1e-5)
    assert jnp.allclose(h, h_ref, atol=1e-5, rtol=1e-5)

    # --- larger batch: multi-step grid (2 steps) + resident weights ---
    B2 = 2048
    x2 = jax.random.normal(k_x2, (B2, D_IN), dtype=jnp.float32)
    y2, h2 = multi_output_forward(x2, params)
    jax.block_until_ready((y2, h2))
    y2_ref, h2_ref = reference_forward(x2, params)
    assert y2.shape == (B2, D_OUT) and h2.shape == (B2, HID)
    assert jnp.allclose(y2, y2_ref, atol=1e-4, rtol=1e-4)
    assert jnp.allclose(h2, h2_ref, atol=1e-4, rtol=1e-4)

    # --- ragged batch (no wrapper pad; last tile masked by Pallas) ---
    B3 = 20
    x3 = jax.random.normal(k_x3, (B3, D_IN), dtype=jnp.float32)
    y3, h3 = multi_output_forward(x3, params)
    jax.block_until_ready((y3, h3))
    y3_ref, h3_ref = reference_forward(x3, params)
    assert y3.shape == (B3, D_OUT) and h3.shape == (B3, HID)
    assert jnp.allclose(y3, y3_ref, atol=1e-5, rtol=1e-5)
    assert jnp.allclose(h3, h3_ref, atol=1e-5, rtol=1e-5)

    # --- bf16 bandwidth path (f32 accumulation, bf16 outputs), loose tolerance ---
    yb, hb = multi_output_forward(x2, params, compute_dtype=jnp.bfloat16)
    jax.block_until_ready((yb, hb))
    assert jnp.allclose(yb.astype(jnp.float32), y2_ref, atol=5e-2, rtol=5e-2)
    assert jnp.allclose(hb.astype(jnp.float32), h2_ref, atol=5e-2, rtol=5e-2)

    print("KERNEL_OK")
</pallas_src>

<mosaic_0001>
module attributes {stable_mosaic.version = 11 : i64} {
  func.func @_multi_output_kernel(%arg0: i32, %arg1: memref<8x32xf32, #tpu.memory_space<vmem>>, %arg2: memref<32x64xf32, #tpu.memory_space<vmem>>, %arg3: memref<1x64xf32, #tpu.memory_space<vmem>>, %arg4: memref<64x64xf32, #tpu.memory_space<vmem>>, %arg5: memref<1x64xf32, #tpu.memory_space<vmem>>, %arg6: memref<64x16xf32, #tpu.memory_space<vmem>>, %arg7: memref<1x16xf32, #tpu.memory_space<vmem>>, %arg8: memref<8x64xf32, #tpu.memory_space<vmem>>, %arg9: memref<8x16xf32, #tpu.memory_space<vmem>>) attributes {dimension_semantics = [#tpu.dimension_semantics<parallel>], iteration_bounds = array<i64: 1>, scalar_prefetch = 0 : i64, scratch_operands = 0 : i64, tpu.core_type = #tpu.core_type<tc>, window_params = [{transform_indices = @transform_0, window_bounds = array<i64: 8, 32>}, {pipeline_mode = #tpu.pipeline_mode<synchronous>, transform_indices = @transform_1, window_bounds = array<i64: 32, 64>}, {pipeline_mode = #tpu.pipeline_mode<synchronous>, transform_indices = @transform_2, window_bounds = array<i64: 1, 64>}, {pipeline_mode = #tpu.pipeline_mode<synchronous>, transform_indices = @transform_3, window_bounds = array<i64: 64, 64>}, {pipeline_mode = #tpu.pipeline_mode<synchronous>, transform_indices = @transform_4, window_bounds = array<i64: 1, 64>}, {pipeline_mode = #tpu.pipeline_mode<synchronous>, transform_indices = @transform_5, window_bounds = array<i64: 64, 16>}, {pipeline_mode = #tpu.pipeline_mode<synchronous>, transform_indices = @transform_6, window_bounds = array<i64: 1, 16>}, {transform_indices = @transform_7, window_bounds = array<i64: 8, 64>}, {transform_indices = @transform_8, window_bounds = array<i64: 8, 16>}]} {
    %c0 = arith.constant 0 : index
    %c0_0 = arith.constant 0 : index
    %0 = vector.load %arg1[%c0, %c0_0] : memref<8x32xf32, #tpu.memory_space<vmem>>, vector<8x32xf32>
    %c0_1 = arith.constant 0 : index
    %c0_2 = arith.constant 0 : index
    %1 = vector.load %arg2[%c0_1, %c0_2] : memref<32x64xf32, #tpu.memory_space<vmem>>, vector<32x64xf32>
    %cst = arith.constant dense<0.000000e+00> : vector<8x64xf32>
    %2 = tpu.matmul %0, %1, %cst {dimension_numbers = #tpu.dot_dimension_numbers<[1], [0], [0], [1], [0, 0, 1, 1], [], []>} : vector<8x32xf32>, vector<32x64xf32>, vector<8x64xf32> -> vector<8x64xf32>
    %c0_3 = arith.constant 0 : index
    %c0_4 = arith.constant 0 : index
    %3 = vector.load %arg3[%c0_3, %c0_4] : memref<1x64xf32, #tpu.memory_space<vmem>>, vector<1x64xf32>
    %4 = vector.broadcast %3 : vector<1x64xf32> to vector<8x64xf32>
    %5 = arith.addf %2, %4 : vector<8x64xf32>
    %cst_5 = arith.constant 0.000000e+00 : f32
    %6 = vector.broadcast %cst_5 : f32 to vector<8x64xf32>
    %7 = arith.maximumf %5, %6 : vector<8x64xf32>
    %c0_6 = arith.constant 0 : index
    %c0_7 = arith.constant 0 : index
    %8 = vector.load %arg8[%c0_6, %c0_7] : memref<8x64xf32, #tpu.memory_space<vmem>>, vector<8x64xf32>
    tpu.vector_store %arg8[%c0_6, %c0_7], %7 {strides = array<i32>} : memref<8x64xf32, #tpu.memory_space<vmem>>, vector<8x64xf32>,
    %c0_8 = arith.constant 0 : index
    %c0_9 = arith.constant 0 : index
    %9 = vector.load %arg4[%c0_8, %c0_9] : memref<64x64xf32, #tpu.memory_space<vmem>>, vector<64x64xf32>
    %cst_10 = arith.constant dense<0.000000e+00> : vector<8x64xf32>
    %10 = tpu.matmul %7, %9, %cst_10 {dimension_numbers = #tpu.dot_dimension_numbers<[1], [0], [0], [1], [0, 0, 1, 1], [], []>} : vector<8x64xf32>, vector<64x64xf32>, vector<8x64xf32> -> vector<8x64xf32>
    %c0_11 = arith.constant 0 : index
    %c0_12 = arith.constant 0 : index
    %11 = vector.load %arg5[%c0_11, %c0_12] : memref<1x64xf32, #tpu.memory_space<vmem>>, vector<1x64xf32>
    %12 = vector.broadcast %11 : vector<1x64xf32> to vector<8x64xf32>
    %13 = arith.addf %10, %12 : vector<8x64xf32>
    %cst_13 = arith.constant 0.000000e+00 : f32
    %14 = vector.broadcast %cst_13 : f32 to vector<8x64xf32>
    %15 = arith.maximumf %13, %14 : vector<8x64xf32>
    %c0_14 = arith.constant 0 : index
    %c0_15 = arith.constant 0 : index
    %16 = vector.load %arg6[%c0_14, %c0_15] : memref<64x16xf32, #tpu.memory_space<vmem>>, vector<64x16xf32>
    %cst_16 = arith.constant dense<0.000000e+00> : vector<8x16xf32>
    %17 = tpu.matmul %15, %16, %cst_16 {dimension_numbers = #tpu.dot_dimension_numbers<[1], [0], [0], [1], [0, 0, 1, 1], [], []>} : vector<8x64xf32>, vector<64x16xf32>, vector<8x16xf32> -> vector<8x16xf32>
    %c0_17 = arith.constant 0 : index
    %c0_18 = arith.constant 0 : index
    %18 = vector.load %arg7[%c0_17, %c0_18] : memref<1x16xf32, #tpu.memory_space<vmem>>, vector<1x16xf32>
    %19 = vector.broadcast %18 : vector<1x16xf32> to vector<8x16xf32>
    %20 = arith.addf %17, %19 : vector<8x16xf32>
    %c0_19 = arith.constant 0 : index
    %c0_20 = arith.constant 0 : index
    %21 = vector.load %arg9[%c0_19, %c0_20] : memref<8x16xf32, #tpu.memory_space<vmem>>, vector<8x16xf32>
    tpu.vector_store %arg9[%c0_19, %c0_20], %20 {strides = array<i32>} : memref<8x16xf32, #tpu.memory_space<vmem>>, vector<8x16xf32>,
    return
  }
  func.func @transform_0(%arg0: i32) -> (i32, i32) {
    %c0_i32 = arith.constant 0 : i32
    %c0_i32_0 = arith.constant 0 : i32
    return %arg0, %c0_i32 : i32, i32
  }
  func.func @transform_1(%arg0: i32) -> (i32, i32) {
    %c0_i32 = arith.constant 0 : i32
    %c0_i32_0 = arith.constant 0 : i32
    %c0_i32_1 = arith.constant 0 : i32
    return %c0_i32, %c0_i32_0 : i32, i32
  }
  func.func @transform_2(%arg0: i32) -> (i32, i32) {
    %c0_i32 = arith.constant 0 : i32
    %c0_i32_0 = arith.constant 0 : i32
    %c0_i32_1 = arith.constant 0 : i32
    return %c0_i32, %c0_i32_0 : i32, i32
  }
  func.func @transform_3(%arg0: i32) -> (i32, i32) {
    %c0_i32 = arith.constant 0 : i32
    %c0_i32_0 = arith.constant 0 : i32
    %c0_i32_1 = arith.constant 0 : i32
    return %c0_i32, %c0_i32_0 : i32, i32
  }
  func.func @transform_4(%arg0: i32) -> (i32, i32) {
    %c0_i32 = arith.constant 0 : i32
    %c0_i32_0 = arith.constant 0 : i32
    %c0_i32_1 = arith.constant 0 : i32
    return %c0_i32, %c0_i32_0 : i32, i32
  }
  func.func @transform_5(%arg0: i32) -> (i32, i32) {
    %c0_i32 = arith.constant 0 : i32
    %c0_i32_0 = arith.constant 0 : i32
    %c0_i32_1 = arith.constant 0 : i32
    return %c0_i32, %c0_i32_0 : i32, i32
  }
  func.func @transform_6(%arg0: i32) -> (i32, i32) {
    %c0_i32 = arith.constant 0 : i32
    %c0_i32_0 = arith.constant 0 : i32
    %c0_i32_1 = arith.constant 0 : i32
    return %c0_i32, %c0_i32_0 : i32, i32
  }
  func.func @transform_7(%arg0: i32) -> (i32, i32) {
    %c0_i32 = arith.constant 0 : i32
    %c0_i32_0 = arith.constant 0 : i32
    return %arg0, %c0_i32 : i32, i32
  }
  func.func @transform_8(%arg0: i32) -> (i32, i32) {
    %c0_i32 = arith.constant 0 : i32
    %c0_i32_0 = arith.constant 0 : i32
    return %arg0, %c0_i32 : i32, i32
  }
}

</mosaic_0001>

<bundles_post_ra>
// kernel: tpu_custom_call.1
= control target key start
LH: loop header
LB: loop body
LE: loop exit
PB: predicated region body
PF: predicated region fallthrough
CT: control target
= control target key end

     0   :  { %14 = vsyncpa [#allocation3], 0  ;;  %s396_s0 = inlined_call_operand.vmem [shape: f32[8,32], index: 0, kind: input, shape index: {}]   ;;  %s397_s1 = inlined_call_operand.hbm [shape: f32[32,64], index: 1, kind: input, shape index: {}]   ;;  %s398_s2 = inlined_call_operand.vmem [shape: f32[1,64], index: 2, kind: input, shape index: {}]   ;;  %s399_s3 = inlined_call_operand.vmem [shape: f32[64,64], index: 3, kind: input, shape index: {}]   ;;  %s400_s4 = inlined_call_operand.vmem [shape: f32[1,64], index: 4, kind: input, shape index: {}]   ;;  %s401_s5 = inlined_call_operand.vmem [shape: f32[64,16], index: 5, kind: input, shape index: {}]   ;;  %s402_s6 = inlined_call_operand.vmem [shape: f32[1,16], index: 6, kind: input, shape index: {}]   ;;  %s403_s7 = inlined_call_operand.hbm [shape: f32[8,64], index: 7, kind: output, shape index: {0}]   ;;  %s404_s8 = inlined_call_operand.hbm [shape: f32[8,16], index: 8, kind: output, shape index: {1}]  }
   0x1   :  { %15 = vsyncpa [#allocation4], 0 }
   0x2   :  { %16 = vsyncpa [#allocation7], 0  ;;  %s23_s29 = sshll.u32 %s397_s1, 4  ;;  %s277_s30 = smov [#allocation2]   ;;  %s24_s29 = int_to_ptr.hbm [resolvable:$true] %s23_s29 }
   0x3   :  { %s25_s9 = sshll.u32 %s277_s30, 4  ;;  %s278_s10 = smov 128   ;;  %s26_s9 = int_to_ptr.vmem [resolvable:$true] %s25_s9 }
   0x4   :  { %s279_s11 = smov 8  }
   0x5   :  { %31 = dma.hbm_to_vmem [thread:$0]  %s24_s29, 512, %s26_s9, [#allocation3], %s278_s10, %s278_s10, %s279_s11  }
   0x6   :  { %271 = dma.done.wait [#allocation3], 512  }
   0x7   :  { %272 = vsyncadd [#allocation3], 4294966784  ;;  %v50_v0 = vld [vmem:[#allocation2 + $0x18] sm:$0xff]  ;;  %v49_v1 = vld [vmem:[#allocation2 + $0x10] sm:$0xff]  ;;  %vm55_vm0 = vcmask 261120   ;;  %vm80_vm1 = vcmask 523264  }
   0x8   :  { %71 = vmatpush.msra.mxu0 %v50_v0  ;;  %v89_v2 = vld [vmem:[%s399_s3 + $0x38] sm:$0xff]  ;;  %v48_v3 = vld [vmem:[#allocation2 + $0x8] sm:$0xff]  ;;  %v88_v4 = vld [vmem:[%s399_s3 + $0x30] sm:$0xff]  ;;  %s280_s25 = smov [#allocation5]   ;;  %s281_s28 = smov [#allocation6]   ;;  %vm153_vm2 = vcmask 130048  }
   0x9   :  { %105 = vmatpush.msra.mxu1 %v89_v2  ;;  %v87_v5 = vld [vmem:[%s399_s3 + $0x28] sm:$0xff]  ;;  %v47_v6 = vld [vmem:[#allocation2] sm:$0xff]  ;;  %v85_v9 = vld [vmem:[%s399_s3 + $0x18] sm:$0xff]  ;;  %s160_s26 = sshll.u32 %s280_s25, 4  ;;  %s171_s29 = sshll.u32 %s281_s28, 4  ;;  %s161_s26 = int_to_ptr.vmem [resolvable:$true] %s160_s26  ;;  %s172_s29 = int_to_ptr.vmem [resolvable:$true] %s171_s29 }
   0xa   :  { %72 = vmatpush.msra.mxu0 %v49_v1  ;;  %v46_v7 = vld [vmem:[%s396_s0] sm:$0xff]  ;;  %v84_v10 = vld [vmem:[%s399_s3 + $0x10] sm:$0xff]  ;;  %v83_v11 = vld [vmem:[%s399_s3 + $0x8] sm:$0xff]  ;;  %s162_s0 = sshll.u32 %s403_s7, 4  ;;  %s173_s9 = sshll.u32 %s404_s8, 4  ;;  %s163_s0 = int_to_ptr.hbm [resolvable:$true] %s162_s0  ;;  %s174_s9 = int_to_ptr.hbm [resolvable:$true] %s173_s9 }
   0xb   :  { %106 = vmatpush.msra.mxu1 %v88_v4  ;;  %v86_v8 = vld [vmem:[%s399_s3 + $0x20] sm:$0xff]  ;;  %v125_v13 = vld [vmem:[%s401_s5 + $0x38] sm:$0xff]  ;;  %v124_v14 = vld [vmem:[%s401_s5 + $0x30] sm:$0xff] }
   0xc   :  { %73 = vmatpush.msra.mxu0 %v48_v3  ;;  %v82_v12 = vld [vmem:[%s399_s3] sm:$0xff]  ;;  %141 = vmatpush.msra.mxu2 %v125_v13  ;;  %v123_v15 = vld [vmem:[%s401_s5 + $0x28] sm:$0xff]  ;;  %v121_v17 = vld [vmem:[%s401_s5 + $0x18] sm:$0xff] }
   0xd   :  { %107 = vmatpush.msra.mxu1 %v87_v5  ;;  %v122_v16 = vld [vmem:[%s401_s5 + $0x20] sm:$0xff]  ;;  %v120_v22 = vld [vmem:[%s401_s5 + $0x10] sm:$0xff]  ;;  %v119_v23 = vld [vmem:[%s401_s5 + $0x8] sm:$0xff] }
   0xe   :  { %74 = vmatpush.msra.mxu0 %v47_v6  ;;  %142 = vmatpush.msra.mxu2 %v124_v14  ;;  %v196_v18 = vld [vmem:[%s398_s2] ss:$0 sm:$0xff] }
   0xf   :  { %188 = vmatmul.msk.f32.vlgmr.msra.gmra.mxu0 %vm55_vm0, %v46_v7  ;;  %108 = vmatpush.msra.mxu1 %v86_v8  ;;  %v118_v24 = vld [vmem:[%s401_s5] sm:$0xff] }
  0x10   :  { %143 = vmatpush.msra.mxu2 %v123_v15  ;;  %v197_v25 = vld [vmem:[%s400_s4] ss:$0 sm:$0xff] }
  0x11   :  { %109 = vmatpush.msra.mxu1 %v85_v9  ;;  %v198_v29 = vld [vmem:[%s402_s6] ss:$0 sm:$0xff] }
  0x12   :  { %144 = vmatpush.msra.mxu2 %v122_v16 }
  0x13   :  { %110 = vmatpush.msra.mxu1 %v84_v10 }
  0x14   :  { %145 = vmatpush.msra.mxu2 %v121_v17 }
  0x15   :  { %111 = vmatpush.msra.mxu1 %v83_v11 }
  0x16   :  { %146 = vmatpush.msra.mxu2 %v120_v22 }
  0x17   :  { %112 = vmatpush.msra.mxu1 %v82_v12 }
  0x18   :  { %147 = vmatpush.msra.mxu2 %v119_v23 }
  0x1a   :  { %148 = vmatpush.msra.mxu2 %v118_v24 }
  0x8c   :  { %v76_v19 = vpop.f32.mrf.mxu0 }
  0x8d   :  { %v77_v20 = vadd.f32 %v196_v18, %v76_v19 }
  0x8f   :  { %v79_v21 = vmax.f32 %v77_v20, 0.0 }
  0x91   :  { %189 = vmatmul.msk.f32.vlgmr.msra.gmra.mxu1 %vm80_vm1, %v79_v21  ;;  %81 = vst.msk [vmem:[#allocation5] sm:$0xff] %vm80_vm1, %v79_v21 }
  0x92   :  { %165 = dma.vmem_to_hbm [thread:$0]  %s161_s26, 128, %s163_s0, [#allocation4]  }
 0x10e   :  { %v114_v26 = vpop.f32.mrf.mxu1 }
 0x10f   :  { %v115_v27 = vadd.f32 %v197_v25, %v114_v26 }
 0x111   :  { %v117_v28 = vmax.f32 %v115_v27, 0.0 }
 0x113   :  { %190 = vmatmul.msk.f32.vlgmr.msra.gmra.mxu2 %vm80_vm1, %v117_v28 }
 0x196   :  { %v150_v30 = vpop.f32.mrf.mxu2 }
 0x197   :  { %v151_v31 = vadd.f32 %v198_v29, %v150_v30 }
 0x199   :  { %154 = vst.msk [vmem:[#allocation6] sm:$0xff] %vm153_vm2, %v151_v31 }
 0x19a   :  { %176 = dma.vmem_to_hbm [thread:$0]  %s172_s29, 128, %s174_s9, [#allocation7]  }
 0x19b   :  { %273 = dma.done.wait [#allocation4], 128  }
 0x19c   :  { %274 = vsyncadd [#allocation4], 4294967168 }
 0x19d   :  { %275 = dma.done.wait [#allocation7], 128  }
 0x19e   :  { %276 = vsyncadd [#allocation7], 4294967168 }
 0x19f   :  { %185 = vsyncpa [#allocation3], 1 }
 0x1a0   :  { %186 = vsyncpa [#allocation4], 1 }
 0x1a1   :  { %187 = vsyncpa [#allocation7], 1 }

</bundles_post_ra>
